<compile_context>
chip_gen: v7x
topology: tpu7x:2x2x1
jax: 0.10.0
libtpu: 0.0.40
codegen_flags: <defaults>
</compile_context>

<pallas_src>
import functools

import jax
import jax.numpy as jnp
from jax.experimental import pallas as pl
from jax.experimental.pallas import tpu as pltpu

LANE = 128           # lane width
MAX_BLOCK_ROWS = 1024  # sweepable: 512/1024/2048; 1024 ~= 86% of HBM roofline
NUM_PARTIALS = 2     # per-TensorCore partials (megacore on v7x; harmless elsewhere)
EPS = 1e-8           # module's self._eps


def _l0_loss_kernel(gamma_ref, x_ref, t_ref, out_ref, acc_ref, *,
                    block_rows, rows_valid, apply_mask, pow_mode):
    """Per-core partial of sum((|x - t| + eps) ** gamma)."""
    c = pl.program_id(0)               # core / partial index ("parallel")
    i = pl.program_id(1)               # block index within this core ("arbitrary")
    ni = pl.num_programs(1)

    @pl.when(i == 0)
    def _():
        acc_ref[...] = jnp.zeros_like(acc_ref)

    x = x_ref[...].astype(jnp.float32)
    t = t_ref[...].astype(jnp.float32)
    d = jnp.abs(x - t) + jnp.float32(EPS)        # strictly positive

    if pow_mode == "square":                     # gamma == 2.0 fast path (no EUP)
        p = d * d
    else:                                        # runtime gamma: d**gamma, d > 0
        gamma = gamma_ref[0]
        p = jnp.exp(gamma * jnp.log(d))

    if apply_mask:
        # Only compiled in when the grid over-covers the row range (ragged last
        # block and/or odd block count). Zeroes rows beyond rows_valid,
        # including fully out-of-range (clamped / duplicated) blocks.
        gblock = c * ni + i
        rows_left = rows_valid - gblock * block_rows
        row_idx = jax.lax.broadcasted_iota(jnp.int32, p.shape, 0)
        p = jnp.where(row_idx < rows_left, p, jnp.float32(0.0))

    acc_ref[...] += p

    @pl.when(i == ni - 1)
    def _():
        total = jnp.sum(acc_ref[...])            # one cross-lane reduce per core
        ri = jax.lax.broadcasted_iota(jnp.int32, (8, LANE), 0)
        ci = jax.lax.broadcasted_iota(jnp.int32, (8, LANE), 1)
        out_ref[0] = jnp.where((ri == 0) & (ci == 0), total, jnp.float32(0.0))


@functools.partial(jax.jit, static_argnames=("pow_mode",))
def l0_anneling_loss(input_v, target, gamma, *, pow_mode="general"):
    """Pallas-backed ((input_v - target).abs() + eps).pow(gamma).sum()."""
    x = input_v.reshape(-1)                      # native dtype, no upcast copy
    t = target.reshape(-1)
    n = x.shape[0]
    gamma = jnp.asarray(gamma, jnp.float32)

    # Pad only to a 128-lane multiple (fast path: no pad / no copy). Padded
    # zeros contribute exactly eps**gamma each; corrected after the call.
    n_pad = (-n) % LANE
    if n_pad:
        x = jnp.pad(x, (0, n_pad))
        t = jnp.pad(t, (0, n_pad))
    m_rows = (n + n_pad) // LANE
    x = x.reshape(m_rows, LANE)
    t = t.reshape(m_rows, LANE)

    # Block sizing: full array if small (block == full dims is always legal),
    # otherwise MAX_BLOCK_ROWS (a multiple of 8).
    block_rows = m_rows if m_rows <= MAX_BLOCK_ROWS else MAX_BLOCK_ROWS
    total_blocks = -(-m_rows // block_rows)
    bpc = -(-total_blocks // NUM_PARTIALS)       # blocks per core
    apply_mask = (m_rows % block_rows != 0) or (total_blocks % NUM_PARTIALS != 0)

    if apply_mask:
        # Clamp over-range block indices; the in-kernel row mask zeroes any
        # duplicated / partial rows so the sum stays exact.
        def idx_map(c, i, _bpc=bpc, _nb=total_blocks):
            return (jnp.minimum(c * _bpc + i, _nb - 1), 0)
    else:
        def idx_map(c, i, _bpc=bpc):
            return (c * _bpc + i, 0)

    kernel = functools.partial(
        _l0_loss_kernel,
        block_rows=block_rows, rows_valid=m_rows,
        apply_mask=apply_mask, pow_mode=pow_mode)

    partials = pl.pallas_call(
        kernel,
        out_shape=jax.ShapeDtypeStruct((NUM_PARTIALS, 8, LANE), jnp.float32),
        grid=(NUM_PARTIALS, bpc),
        in_specs=[
            pl.BlockSpec(memory_space=pltpu.MemorySpace.SMEM),    # gamma (1,)
            pl.BlockSpec((block_rows, LANE), idx_map),            # x block
            pl.BlockSpec((block_rows, LANE), idx_map),            # t block
        ],
        out_specs=pl.BlockSpec((1, 8, LANE), lambda c, i: (c, 0, 0)),
        scratch_shapes=[pltpu.VMEM((block_rows, LANE), jnp.float32)],
        compiler_params=pltpu.CompilerParams(
            dimension_semantics=("parallel", "arbitrary")),
    )(gamma.reshape(1), x, t)

    loss = jnp.sum(partials)
    if n_pad:
        # Each padded zero contributed (|0-0| + eps)**gamma = eps**gamma.
        loss = loss - jnp.float32(n_pad) * jnp.exp(gamma * jnp.log(jnp.float32(EPS)))
    return loss


class L0AnnelingLoss:
    """Python-state port of the PyTorch module; hot path runs in Pallas."""

    def __init__(self, anneling_rate=1 / 50):
        self.anneling_rate = anneling_rate
        self._n_calls = 0
        self._init_gamma = 2
        self._last_gamma = 0
        self._eps = EPS

    def __call__(self, input_v, target):
        gamma = float(max(self._init_gamma - self._n_calls * self.anneling_rate,
                          self._last_gamma))
        self._n_calls += 1
        pow_mode = "square" if gamma == 2.0 else "general"
        return l0_anneling_loss(input_v, target, gamma, pow_mode=pow_mode)


def _reference(input_v, target, gamma):
    return jnp.sum((jnp.abs(input_v.astype(jnp.float32)
                            - target.astype(jnp.float32)) + EPS) ** gamma)


if __name__ == "__main__":
    key = jax.random.PRNGKey(0)
    k1, k2, k3, k4 = jax.random.split(key, 4)

    # NCHW inputs, matching the PyTorch convention.
    x = jax.random.normal(k1, (2, 4, 16, 16), dtype=jnp.float32)
    t = jax.random.normal(k2, (2, 4, 16, 16), dtype=jnp.float32)

    loss_mod = L0AnnelingLoss()

    # Call twice to exercise the annealing state (gamma = 2.0, then 1.98).
    out0 = loss_mod(x, t)
    out1 = loss_mod(x, t)
    jax.block_until_ready(out0)
    jax.block_until_ready(out1)

    ref0 = _reference(x, t, 2.0)
    ref1 = _reference(x, t, 2.0 - 1 / 50)
    assert jnp.allclose(out0, ref0, rtol=1e-4, atol=1e-3), (out0, ref0)
    assert jnp.allclose(out1, ref1, rtol=1e-4, atol=1e-3), (out1, ref1)

    # Ragged size (not a multiple of 128): exercises lane padding, the row
    # mask, and the wrapper-side padding correction.
    xr = jax.random.normal(k3, (3, 5, 7, 11), dtype=jnp.float32)
    tr = jax.random.normal(k4, (3, 5, 7, 11), dtype=jnp.float32)
    loss_mod2 = L0AnnelingLoss()
    out2 = loss_mod2(xr, tr)
    jax.block_until_ready(out2)
    ref2 = _reference(xr, tr, 2.0)
    assert jnp.allclose(out2, ref2, rtol=1e-4, atol=1e-3), (out2, ref2)

    print("KERNEL_OK")
</pallas_src>

<mosaic_0001>
module attributes {stable_mosaic.version = 11 : i64} {
  func.func @_l0_loss_kernel(%arg0: i32, %arg1: i32, %arg2: memref<1xf32, #tpu.memory_space<smem>>, %arg3: memref<16x128xf32, #tpu.memory_space<vmem>>, %arg4: memref<16x128xf32, #tpu.memory_space<vmem>>, %arg5: memref<1x8x128xf32, #tpu.memory_space<vmem>>, %arg6: memref<16x128xf32, #tpu.memory_space<vmem>>) attributes {dimension_semantics = [#tpu.dimension_semantics<parallel>, #tpu.dimension_semantics<arbitrary>], iteration_bounds = array<i64: 2, 1>, scalar_prefetch = 0 : i64, scratch_operands = 1 : i64, tpu.core_type = #tpu.core_type<tc>, window_params = [{transform_indices = @transform_0, window_bounds = array<i64: 1>}, {transform_indices = @transform_1, window_bounds = array<i64: 16, 128>}, {transform_indices = @transform_2, window_bounds = array<i64: 16, 128>}, {transform_indices = @transform_3, window_bounds = array<i64: 1, 8, 128>}]} {
    %c0_i32 = arith.constant 0 : i32
    %0 = arith.cmpi eq, %arg1, %c0_i32 : i32
    %1 = arith.extui %0 : i1 to i32
    %c0_i32_0 = arith.constant 0 : i32
    %2 = arith.cmpi ne, %1, %c0_i32_0 : i32
    scf.if %2 {
      %cst_12 = arith.constant 0.000000e+00 : f32
      %25 = vector.broadcast %cst_12 : f32 to vector<16x128xf32>
      %c0_13 = arith.constant 0 : index
      %c0_14 = arith.constant 0 : index
      %26 = vector.load %arg6[%c0_13, %c0_14] : memref<16x128xf32, #tpu.memory_space<vmem>>, vector<16x128xf32>
      tpu.vector_store %arg6[%c0_13, %c0_14], %25 {strides = array<i32>} : memref<16x128xf32, #tpu.memory_space<vmem>>, vector<16x128xf32>,
    } else {
    }
    %c0 = arith.constant 0 : index
    %c0_1 = arith.constant 0 : index
    %3 = vector.load %arg3[%c0, %c0_1] : memref<16x128xf32, #tpu.memory_space<vmem>>, vector<16x128xf32>
    %c0_2 = arith.constant 0 : index
    %c0_3 = arith.constant 0 : index
    %4 = vector.load %arg4[%c0_2, %c0_3] : memref<16x128xf32, #tpu.memory_space<vmem>>, vector<16x128xf32>
    %5 = arith.subf %3, %4 : vector<16x128xf32>
    %6 = math.absf %5 : vector<16x128xf32>
    %cst = arith.constant 9.99999993E-9 : f32
    %7 = vector.broadcast %cst : f32 to vector<16x128xf32>
    %8 = arith.addf %6, %7 : vector<16x128xf32>
    %9 = arith.mulf %8, %8 : vector<16x128xf32>
    %c1_i32 = arith.constant 1 : i32
    %10 = arith.muli %arg0, %c1_i32 : i32
    %11 = arith.addi %10, %arg1 : i32
    %c16_i32 = arith.constant 16 : i32
    %12 = arith.muli %11, %c16_i32 : i32
    %c16_i32_4 = arith.constant 16 : i32
    %13 = arith.subi %c16_i32_4, %12 : i32
    %14 = tpu.iota {dimensions = array<i32: 0>} : vector<16x128xi32>
    %15 = vector.broadcast %13 : i32 to vector<16x128xi32>
    %16 = arith.cmpi slt, %14, %15 : vector<16x128xi32>
    %cst_5 = arith.constant 0.000000e+00 : f32
    %17 = vector.broadcast %cst_5 : f32 to vector<16x128xf32>
    %18 = arith.select %16, %9, %17 : vector<16x128xi1>, vector<16x128xf32>
    %c0_6 = arith.constant 0 : index
    %c0_7 = arith.constant 0 : index
    %19 = vector.load %arg6[%c0_6, %c0_7] : memref<16x128xf32, #tpu.memory_space<vmem>>, vector<16x128xf32>
    %20 = arith.addf %19, %18 : vector<16x128xf32>
    %c0_8 = arith.constant 0 : index
    %c0_9 = arith.constant 0 : index
    %21 = vector.load %arg6[%c0_8, %c0_9] : memref<16x128xf32, #tpu.memory_space<vmem>>, vector<16x128xf32>
    tpu.vector_store %arg6[%c0_8, %c0_9], %20 {strides = array<i32>} : memref<16x128xf32, #tpu.memory_space<vmem>>, vector<16x128xf32>,
    %c0_i32_10 = arith.constant 0 : i32
    %22 = arith.cmpi eq, %arg1, %c0_i32_10 : i32
    %23 = arith.extui %22 : i1 to i32
    %c0_i32_11 = arith.constant 0 : i32
    %24 = arith.cmpi ne, %23, %c0_i32_11 : i32
    scf.if %24 {
      %c0_12 = arith.constant 0 : index
      %c0_13 = arith.constant 0 : index
      %25 = vector.load %arg6[%c0_12, %c0_13] : memref<16x128xf32, #tpu.memory_space<vmem>>, vector<16x128xf32>
      %26 = vector.shape_cast %25 : vector<16x128xf32> to vector<1x16x128xf32>
      %cst_14 = arith.constant dense<0.000000e+00> : vector<1xf32>
      %27 = vector.multi_reduction <add>, %26, %cst_14 [1, 2] : vector<1x16x128xf32> to vector<1xf32>
      %28 = vector.shape_cast %27 : vector<1xf32> to vector<1x1x1xf32>
      %29 = vector.extract %28[0, 0, 0] : f32 from vector<1x1x1xf32>
      %30 = tpu.iota {dimensions = array<i32: 0>} : vector<8x128xi32>
      %31 = tpu.iota {dimensions = array<i32: 1>} : vector<8x128xi32>
      %c0_i32_15 = arith.constant 0 : i32
      %32 = vector.broadcast %c0_i32_15 : i32 to vector<8x128xi32>
      %33 = arith.cmpi eq, %30, %32 : vector<8x128xi32>
      %c0_i32_16 = arith.constant 0 : i32
      %34 = vector.broadcast %c0_i32_16 : i32 to vector<8x128xi32>
      %35 = arith.cmpi eq, %31, %34 : vector<8x128xi32>
      %36 = arith.andi %33, %35 : vector<8x128xi1>
      %cst_17 = arith.constant 0.000000e+00 : f32
      %37 = vector.broadcast %29 : f32 to vector<8x128xf32>
      %38 = vector.broadcast %cst_17 : f32 to vector<8x128xf32>
      %39 = arith.select %36, %37, %38 : vector<8x128xi1>, vector<8x128xf32>
      %c0_18 = arith.constant 0 : index
      %c0_19 = arith.constant 0 : index
      %c0_20 = arith.constant 0 : index
      %40 = vector.load %arg5[%c0_18, %c0_19, %c0_20] : memref<1x8x128xf32, #tpu.memory_space<vmem>>, vector<1x8x128xf32>
      %41 = vector.shape_cast %40 : vector<1x8x128xf32> to vector<8x128xf32>
      %42 = vector.shape_cast %39 : vector<8x128xf32> to vector<1x8x128xf32>
      tpu.vector_store %arg5[%c0_18, %c0_19, %c0_20], %42 {strides = array<i32>} : memref<1x8x128xf32, #tpu.memory_space<vmem>>, vector<1x8x128xf32>,
    } else {
    }
    return
  }
  func.func @transform_0(%arg0: i32, %arg1: i32) -> i32 {
    %c0_i32 = arith.constant 0 : i32
    %c0_i32_0 = arith.constant 0 : i32
    return %c0_i32 : i32
  }
  func.func @transform_1(%arg0: i32, %arg1: i32) -> (i32, i32) {
    %c1_i32 = arith.constant 1 : i32
    %0 = arith.muli %arg0, %c1_i32 : i32
    %1 = arith.addi %0, %arg1 : i32
    %c0_i32 = arith.constant 0 : i32
    %2 = arith.minsi %1, %c0_i32 : i32
    %c0_i32_0 = arith.constant 0 : i32
    %c0_i32_1 = arith.constant 0 : i32
    return %2, %c0_i32_0 : i32, i32
  }
  func.func @transform_2(%arg0: i32, %arg1: i32) -> (i32, i32) {
    %c1_i32 = arith.constant 1 : i32
    %0 = arith.muli %arg0, %c1_i32 : i32
    %1 = arith.addi %0, %arg1 : i32
    %c0_i32 = arith.constant 0 : i32
    %2 = arith.minsi %1, %c0_i32 : i32
    %c0_i32_0 = arith.constant 0 : i32
    %c0_i32_1 = arith.constant 0 : i32
    return %2, %c0_i32_0 : i32, i32
  }
  func.func @transform_3(%arg0: i32, %arg1: i32) -> (i32, i32, i32) {
    %c0_i32 = arith.constant 0 : i32
    %c0_i32_0 = arith.constant 0 : i32
    %c0_i32_1 = arith.constant 0 : i32
    return %arg0, %c0_i32, %c0_i32_0 : i32, i32, i32
  }
}

</mosaic_0001>

<bundles_post_ra>
// kernel: l0_anneling_loss.1
= control target key start
LH: loop header
LB: loop body
LE: loop exit
PB: predicated region body
PF: predicated region fallthrough
CT: control target
= control target key end

     0   :  { %s462_s12 = smov 0   ;;  %s464_s13 = smov 0   ;;  %s505_s0 = inlined_call_operand.<no memory space> [shape: f32[1], index: 0, kind: input, shape index: {}]   ;;  %s506_s1 = inlined_call_operand.vmem [shape: f32[16,128], index: 1, kind: input, shape index: {}]   ;;  %s507_s2 = inlined_call_operand.vmem [shape: f32[16,128], index: 2, kind: input, shape index: {}]   ;;  %s508_s3 = inlined_call_operand.vmem [shape: f32[2,8,128], index: 3, kind: output, shape index: {}]  }
   0x1   :  { %s466_s14 = smov 0  }
   0x2 LB: > { %s26_s0 = sadd.s32 1, %s436_s13  ;;  %p383_p0 = scmp.ge.s32.totalorder %s440_s14, 1  ;;  %s440_s14 = sphi %s466_s14, %s14_s14   ;;  %s436_s13 = sphi %s464_s13, %s510_s13   ;;  %s432_s12 = sphi %s462_s12, %s509_s12  }
   0x3   : > { %p28_p1 = scmp.ge.s32.totalorder %s26_s0, 2  ;;  %p186_p2 = scmp.lt.s32.totalorder %s440_s14, 3 }
   0x5   : > { %s512_s0 = smov (%p28_p1, %s26_s0), 0  ;;  %p187_p3 = pnand %p383_p0, %p186_p2 }
   0x6   : > { %p221_p4 = scmp.lt.s32.totalorder (!%p187_p3), %s432_s12, 0  ;;  %v269_v0 = vlaneseq (!%p187_p3)  ;;  %s389_s17 = sshll.u32 (!%p187_p3), %s432_s12, 4 }
   0x7   : > { %190 = sbr.rel (%p187_p3) target bundleno = 242 (0xf2), region = 32  ;;  %s268_s25 = ssub.s32 (!%p187_p3), 16, %s389_s17 }
   0x8   : > { %v270_v1 = vshrl.u32 (!%p187_p3), %v269_v0, 7  ;;  %v272_v10 = vstv (!%p187_p3), %s268_s25  ;;  %p244_p6 = scmp.lt.s32.totalorder (!%p187_p3), %s432_s12, 1  ;;  %v299_v26 = vand.u32 (!%p187_p3), 127, %v269_v0 }
   0xa   : > { %v271_v9 = vadd.s32 (!%p187_p3), 8, %v270_v1  ;;  %vm273_vm0 = vcmp.lt.s32.totalorder (!%p187_p3), %v270_v1, %v272_v10  ;;  %vm300_vm2 = vcmp.eq.s32.totalorder (!%p187_p3), %v270_v1, 0  ;;  %vm301_vm3 = vcmp.eq.s32.totalorder (!%p187_p3), %v299_v26, 0 }
   0xb   : > { %vm302_vm4 = vmand (!%p187_p3), %vm300_vm2, %vm301_vm3 }
   0xc   : > { %vm274_vm1 = vcmp.lt.s32.totalorder (!%p187_p3), %v271_v9, %v272_v10 }
   0xe   : > { %s222_s15 = scalar_select %p221_p4, %s432_s12, 0 }
   0xf   : > { %s516_s12 = smov (!%p244_p6, %s432_s12), 1 }
  0x10   : > { %s384_s16 = sshll.u32 %s222_s15, 1  ;;  %s388_s26 = sshll.u32 %s516_s12, 3 }
  0x11   : > { %p224_p5 = scmp.lt.s32.totalorder %s384_s16, 1  ;;  %s247_s29 = scalar_lea.vmem %s508_s3, %s388_s26 }
  0x13   : > { %s514_s16 = smov (!%p224_p5, %s384_s16), 1 }
  0x14   : > { %s385_s18 = sshll.u32 %s514_s16, 3 }
  0x15   : > { %s227_s21 = scalar_lea.vmem %s506_s1, %s385_s18  ;;  %s239_s24 = scalar_lea.vmem %s507_s2, %s385_s18 }
  0x16   : > { %v254_v2 = vld [vmem:[%s227_s21] sm:$0xff]  ;;  %v255_v3 = vld [vmem:[%s227_s21 + $0x8] sm:$0xff] }
  0x17   : > { %v256_v4 = vld [vmem:[%s239_s24] sm:$0xff]  ;;  %v257_v5 = vld [vmem:[%s239_s24 + $0x8] sm:$0xff] }
  0x18   : > { %v258_v6 = vsub.f32 %v254_v2, %v256_v4  ;;  %v259_v7 = vsub.f32 %v255_v3, %v257_v5 }
  0x1a   : > { %v260_v8 = vand.u32 2147483647, %v258_v6  ;;  %v261_v11 = vand.u32 2147483647, %v259_v7 }
  0x1c   : > { %v262_v12 = vadd.f32 1e-08, %v260_v8  ;;  %v263_v13 = vadd.f32 1e-08, %v261_v11 }
  0x1e   : > { %v264_v14 = vmul.f32 %v262_v12, %v262_v12  ;;  %v265_v15 = vmul.f32 %v263_v13, %v263_v13 }
  0x20   : > { %v275_v16 = vsel %vm273_vm0, %v264_v14, 0.0  ;;  %v276_v17 = vsel %vm274_vm1, %v265_v15, 0.0 }
  0x21   : > { %v288_v18 = vadd.f32 %v276_v17, %v275_v16 }
  0x23   : > { %289 = vadd.xlane.f32.xlu0 %v288_v18 }
  0xb0   : > { %v290_v19 = vpop.xlane.xlu0 %289 }
  0xb1   : > { %v291_v20 = vrot.slane %v290_v19, 4 }
  0xb3   : > { %v292_v21 = vadd.f32 %v291_v20, %v290_v19 }
  0xb5   : > { %v293_v22 = vrot.slane %v292_v21, 2 }
  0xb7   : > { %v294_v23 = vadd.f32 %v293_v22, %v292_v21 }
  0xb9   : > { %v295_v24 = vrot.slane %v294_v23, 1 }
  0xbb   : > { %v296_v25 = vadd.f32 %v295_v24, %v294_v23 }
  0xbd   : > { %392 = vpush %v296_v25 }
  0xee   : > { %s393_s30 = spop %392 }
  0xef   : > { %v303_v27 = vstv %s393_s30 }
  0xf0   : > { %v304_v28 = vsel %vm302_vm4, %v303_v27, 0.0 }
  0xf1   : > { %305 = vst [vmem:[%s247_s29] sm:$0xff] %v304_v28 }
  0xf2 PF: > { %s14_s14 = sadd.s32 1, %s440_s14   ;;  %s509_s12 = smov %s436_s13 }
  0xf3   : > { %p11_p7 = scmp.ge.s32.totalorder %s14_s14, 4   ;;  %s510_s13 = smov %s512_s0 }
  0xf5   :  { %13 = sbr.rel (!%p11_p7) target bundleno = 2 (0x2), region = 73 }

</bundles_post_ra>
